<compile_context>
chip_gen: v5e
topology: v5e:2x2
jax: 0.10.0
libtpu: 0.0.40
codegen_flags: <defaults>
</compile_context>

<pallas_src>
import math

import jax
import jax.numpy as jnp
from jax.experimental import pallas as pl
from jax.experimental.pallas import tpu as pltpu


# ----------------------------------------------------------------------------- helpers

def _cdiv(a, b):
    return -(-a // b)


def _round_up(x, m):
    return _cdiv(x, m) * m


def _vmem_capacity_bytes():
    """Per-core VMEM capacity; conservative fallback (v7x = 64 MiB) if the query fails."""
    try:
        return int(pltpu.get_tpu_info().vmem_capacity_bytes)
    except Exception:
        return 64 * 1024 * 1024


# ----------------------------------------------------------------------------- fused GCN kernel

def _gcn_fused_kernel_bias(x_ref, w_ref, bias_ref, adj_ref, o_ref, support_ref):
    # Compute support = X @ W once; it stays VMEM-resident for all later row-blocks.
    @pl.when(pl.program_id(0) == 0)
    def _():
        support_ref[...] = jnp.dot(x_ref[...], w_ref[...],
                                   preferred_element_type=jnp.float32)

    acc = jnp.dot(adj_ref[...], support_ref[...], preferred_element_type=jnp.float32)
    o_ref[...] = (acc + bias_ref[...]).astype(o_ref.dtype)


def _gcn_fused_kernel_nobias(x_ref, w_ref, adj_ref, o_ref, support_ref):
    @pl.when(pl.program_id(0) == 0)
    def _():
        support_ref[...] = jnp.dot(x_ref[...], w_ref[...],
                                   preferred_element_type=jnp.float32)

    o_ref[...] = jnp.dot(adj_ref[...], support_ref[...],
                         preferred_element_type=jnp.float32).astype(o_ref.dtype)


def _fused_row_block(n_nodes, tm_cap=512):
    """Row-block size over adj rows (multiple of 8); keep >= 2 blocks when possible."""
    tm = min(_round_up(n_nodes, 8), tm_cap)
    if tm >= n_nodes and n_nodes > 8:
        tm = _round_up(_cdiv(n_nodes, 2), 8)
    return tm


def _fused_vmem_bytes(n_nodes, f_in, f_out, tm, itemsize):
    # support scratch (f32) + double-buffered X, W, bias, adj tile, out tile.
    return (4 * n_nodes * f_out
            + 2 * itemsize * (n_nodes * f_in + f_in * f_out + f_out)
            + 2 * itemsize * (tm * n_nodes + tm * f_out))


def _fused_fits(n_nodes, f_in, f_out, itemsize=4, tm_cap=512):
    tm = _fused_row_block(n_nodes, tm_cap)
    return _fused_vmem_bytes(n_nodes, f_in, f_out, tm, itemsize) <= 0.6 * _vmem_capacity_bytes()


def gcn_fused(x, adj, weight, bias=None, *, tm_cap=512):
    """output = adj @ (x @ weight) (+ bias), in one pallas_call (support kept in VMEM)."""
    n_nodes, f_in = x.shape
    f_in2, f_out = weight.shape
    assert f_in == f_in2, (x.shape, weight.shape)
    assert adj.shape == (n_nodes, n_nodes), adj.shape

    tm = _fused_row_block(n_nodes, tm_cap)
    grid = (_cdiv(n_nodes, tm),)

    has_bias = bias is not None
    operands = [x, weight]
    in_specs = [
        pl.BlockSpec((n_nodes, f_in), lambda i: (0, 0)),    # X: resident, DMA'd once
        pl.BlockSpec((f_in, f_out), lambda i: (0, 0)),      # W: resident, DMA'd once
    ]
    if has_bias:
        operands.append(bias.astype(jnp.float32).reshape(1, f_out))
        in_specs.append(pl.BlockSpec((1, f_out), lambda i: (0, 0)))
    operands.append(adj)
    in_specs.append(pl.BlockSpec((tm, n_nodes), lambda i: (i, 0)))  # stream adj row-blocks

    itemsize = x.dtype.itemsize
    need = _fused_vmem_bytes(n_nodes, f_in, f_out, tm, itemsize)
    cap = _vmem_capacity_bytes()
    vmem_limit = int(min(max(2 * need, 32 * 1024 * 1024), 0.9 * cap))

    kernel = _gcn_fused_kernel_bias if has_bias else _gcn_fused_kernel_nobias

    return pl.pallas_call(
        kernel,
        out_shape=jax.ShapeDtypeStruct((n_nodes, f_out), x.dtype),
        grid_spec=pltpu.PrefetchScalarGridSpec(
            num_scalar_prefetch=0,
            grid=grid,
            in_specs=in_specs,
            out_specs=pl.BlockSpec((tm, f_out), lambda i: (i, 0)),
            scratch_shapes=[pltpu.VMEM((n_nodes, f_out), jnp.float32)],
        ),
        compiler_params=pltpu.CompilerParams(
            # Sequential: step 0 fills the VMEM-resident support scratch that later
            # row-blocks read, so this axis must NOT be split across cores.
            dimension_semantics=("arbitrary",),
            vmem_limit_bytes=vmem_limit),
    )(*operands)


# ----------------------------------------------------------------------------- tiled fallback

def _mm_bias_kernel_nok(a_ref, b_ref, bias_ref, o_ref):
    o_ref[...] = (jnp.dot(a_ref[...], b_ref[...], preferred_element_type=jnp.float32)
                  + bias_ref[...]).astype(o_ref.dtype)


def _mm_kernel_nok(a_ref, b_ref, o_ref):
    o_ref[...] = jnp.dot(a_ref[...], b_ref[...],
                         preferred_element_type=jnp.float32).astype(o_ref.dtype)


def _mm_bias_kernel_acc(a_ref, b_ref, bias_ref, o_ref, acc_ref):
    k = pl.program_id(2)

    @pl.when(k == 0)
    def _():
        acc_ref[...] = jnp.zeros_like(acc_ref)

    acc_ref[...] += jnp.dot(a_ref[...], b_ref[...], preferred_element_type=jnp.float32)

    @pl.when(k == pl.num_programs(2) - 1)
    def _():
        o_ref[...] = (acc_ref[...] + bias_ref[...]).astype(o_ref.dtype)


def _mm_kernel_acc(a_ref, b_ref, o_ref, acc_ref):
    k = pl.program_id(2)

    @pl.when(k == 0)
    def _():
        acc_ref[...] = jnp.zeros_like(acc_ref)

    acc_ref[...] += jnp.dot(a_ref[...], b_ref[...], preferred_element_type=jnp.float32)

    @pl.when(k == pl.num_programs(2) - 1)
    def _():
        o_ref[...] = acc_ref[...].astype(o_ref.dtype)


def matmul_bias(a, b, bias=None, *, tm_cap=512, tn_cap=512, tk_cap=1024):
    """C = a @ b (+ bias). Tiled Pallas matmul; K axis collapsed when it fits one tile."""
    M, K = a.shape
    K2, N = b.shape
    assert K == K2, (a.shape, b.shape)
    out_dtype = a.dtype

    TM = min(_round_up(M, 8), tm_cap)
    TN = min(_round_up(N, 128), tn_cap)
    TK = min(_round_up(K, 128), tk_cap)

    Mp, Kp, Np = _round_up(M, TM), _round_up(K, TK), _round_up(N, TN)

    a_p = jnp.pad(a, ((0, Mp - M), (0, Kp - K))) if (Mp, Kp) != (M, K) else a
    b_p = jnp.pad(b, ((0, Kp - K), (0, Np - N))) if (Kp, Np) != (K, N) else b

    has_bias = bias is not None
    operands = [a_p, b_p]
    if has_bias:
        operands.append(jnp.pad(bias.astype(jnp.float32), (0, Np - N)).reshape(1, Np))

    nk = Kp // TK
    itemsize = max(a.dtype.itemsize, b.dtype.itemsize)
    tile_bytes = (2 * TM * TK + 2 * TK * TN) * itemsize + (3 * TM * TN + 2 * TN) * 4
    cap = _vmem_capacity_bytes()
    vmem_limit = int(min(max(2 * tile_bytes, 32 * 1024 * 1024), 0.9 * cap))

    if nk == 1:
        # Whole contraction fits one tile: 2-D grid, no accumulator, direct write.
        grid = (Mp // TM, Np // TN)
        in_specs = [
            pl.BlockSpec((TM, TK), lambda i, j: (i, 0)),
            pl.BlockSpec((TK, TN), lambda i, j: (0, j)),
        ]
        if has_bias:
            in_specs.append(pl.BlockSpec((1, TN), lambda i, j: (0, j)))
        out_spec = pl.BlockSpec((TM, TN), lambda i, j: (i, j))
        kernel = _mm_bias_kernel_nok if has_bias else _mm_kernel_nok
        scratch = []
        dims = ("parallel", "parallel")
    else:
        grid = (Mp // TM, Np // TN, nk)
        in_specs = [
            pl.BlockSpec((TM, TK), lambda i, j, k: (i, k)),
            pl.BlockSpec((TK, TN), lambda i, j, k: (k, j)),
        ]
        if has_bias:
            in_specs.append(pl.BlockSpec((1, TN), lambda i, j, k: (0, j)))
        out_spec = pl.BlockSpec((TM, TN), lambda i, j, k: (i, j))
        kernel = _mm_bias_kernel_acc if has_bias else _mm_kernel_acc
        scratch = [pltpu.VMEM((TM, TN), jnp.float32)]
        dims = ("parallel", "parallel", "arbitrary")

    out = pl.pallas_call(
        kernel,
        out_shape=jax.ShapeDtypeStruct((Mp, Np), out_dtype),
        grid_spec=pltpu.PrefetchScalarGridSpec(
            num_scalar_prefetch=0,
            grid=grid,
            in_specs=in_specs,
            out_specs=out_spec,
            scratch_shapes=scratch,
        ),
        compiler_params=pltpu.CompilerParams(
            dimension_semantics=dims,
            vmem_limit_bytes=vmem_limit),
    )(*operands)

    if (Mp, Np) != (M, N):
        out = out[:M, :N]
    return out


# ----------------------------------------------------------------------------- module wrapper

class GraphConvolutionPallas:
    """Pallas port of the PyTorch GraphConvolution layer (forward only).

    forward(input, adj): support = input @ weight; output = adj @ support (+ bias)
    """

    def __init__(self, in_features, out_features, bias=True, key=None):
        if key is None:
            key = jax.random.PRNGKey(0)
        self.in_features = in_features
        self.out_features = out_features
        stdv = 1.0 / math.sqrt(out_features)
        key, wk, bk = jax.random.split(key, 3)
        self.weight = jax.random.uniform(
            wk, (in_features, out_features), jnp.float32, minval=-stdv, maxval=stdv)
        if bias:
            self.bias = jax.random.uniform(
                bk, (out_features,), jnp.float32, minval=-stdv, maxval=stdv)
        else:
            self.bias = None

    def __call__(self, input, adj, *, force_unfused=False):
        n_nodes = input.shape[0]
        if not force_unfused and _fused_fits(n_nodes, self.in_features,
                                             self.out_features,
                                             itemsize=input.dtype.itemsize):
            # Single fused kernel: no HBM round trip for the support intermediate.
            return gcn_fused(input, adj, self.weight, self.bias)
        # Fallback for very large graphs: two tiled matmuls (bias only in the 2nd,
        # matching the PyTorch module).
        # TODO(synk): optionally keep `support` in bf16 between the two calls to halve
        # intermediate HBM traffic (kept f32 here for exact parity with the reference).
        support = matmul_bias(input, self.weight)
        return matmul_bias(adj, support, self.bias)


def _reference_forward(input, adj, weight, bias):
    out = adj @ (input @ weight)
    if bias is not None:
        out = out + bias
    return out


# ----------------------------------------------------------------------------- self test

if __name__ == "__main__":
    key = jax.random.PRNGKey(0)
    key, xk, ak = jax.random.split(key, 3)

    n_nodes, in_features, out_features = 16, 8, 32
    x = jax.random.normal(xk, (n_nodes, in_features), jnp.float32)

    # Deterministic dense "adjacency" (symmetrized, self-loops, row-normalized).
    adj_raw = jax.random.uniform(ak, (n_nodes, n_nodes), jnp.float32)
    adj = (adj_raw + adj_raw.T) * 0.5 + jnp.eye(n_nodes, dtype=jnp.float32)
    adj = adj / adj.sum(axis=1, keepdims=True)

    layer = GraphConvolutionPallas(in_features, out_features, bias=True,
                                   key=jax.random.PRNGKey(0))
    ref = jax.block_until_ready(_reference_forward(x, adj, layer.weight, layer.bias))

    # 1) Fused path (default).
    out_fused = jax.block_until_ready(layer(x, adj))
    assert out_fused.shape == (n_nodes, out_features), out_fused.shape
    if not jnp.allclose(out_fused, ref, atol=1e-4, rtol=1e-4):
        raise AssertionError("fused GCN kernel does not match reference")

    # 2) Tiled fallback path (forced), same semantics.
    out_tiled = jax.block_until_ready(layer(x, adj, force_unfused=True))
    if not jnp.allclose(out_tiled, ref, atol=1e-4, rtol=1e-4):
        raise AssertionError("tiled fallback GCN does not match reference")

    # 3) No-bias variant.
    layer_nb = GraphConvolutionPallas(in_features, out_features, bias=False,
                                      key=jax.random.PRNGKey(1))
    ref_nb = jax.block_until_ready(_reference_forward(x, adj, layer_nb.weight, None))
    out_nb = jax.block_until_ready(layer_nb(x, adj))
    if not jnp.allclose(out_nb, ref_nb, atol=1e-4, rtol=1e-4):
        raise AssertionError("no-bias fused GCN does not match reference")

    # 4) Exercise the K-accumulating tiled kernel with a forced small TK.
    a_t = jax.random.normal(jax.random.PRNGKey(2), (16, 256), jnp.float32)
    b_t = jax.random.normal(jax.random.PRNGKey(3), (256, 32), jnp.float32)
    bias_t = jax.random.normal(jax.random.PRNGKey(4), (32,), jnp.float32)
    out_acc = jax.block_until_ready(matmul_bias(a_t, b_t, bias_t, tk_cap=128))
    if not jnp.allclose(out_acc, a_t @ b_t + bias_t, atol=1e-3, rtol=1e-3):
        raise AssertionError("K-accumulating tiled matmul does not match reference")

    print("KERNEL_OK")
</pallas_src>

<mosaic_0001>
module attributes {stable_mosaic.version = 11 : i64} {
  func.func @_gcn_fused_kernel_bias(%arg0: i32, %arg1: memref<16x8xf32, #tpu.memory_space<vmem>>, %arg2: memref<8x32xf32, #tpu.memory_space<vmem>>, %arg3: memref<1x32xf32, #tpu.memory_space<vmem>>, %arg4: memref<8x16xf32, #tpu.memory_space<vmem>>, %arg5: memref<8x32xf32, #tpu.memory_space<vmem>>, %arg6: memref<16x32xf32, #tpu.memory_space<vmem>>) attributes {dimension_semantics = [#tpu.dimension_semantics<arbitrary>], iteration_bounds = array<i64: 2>, scalar_prefetch = 0 : i64, scratch_operands = 1 : i64, tpu.core_type = #tpu.core_type<tc>, window_params = [{pipeline_mode = #tpu.pipeline_mode<synchronous>, transform_indices = @transform_0, window_bounds = array<i64: 16, 8>}, {pipeline_mode = #tpu.pipeline_mode<synchronous>, transform_indices = @transform_1, window_bounds = array<i64: 8, 32>}, {pipeline_mode = #tpu.pipeline_mode<synchronous>, transform_indices = @transform_2, window_bounds = array<i64: 1, 32>}, {transform_indices = @transform_3, window_bounds = array<i64: 8, 16>}, {transform_indices = @transform_4, window_bounds = array<i64: 8, 32>}]} {
    %c0_i32 = arith.constant 0 : i32
    %0 = arith.cmpi eq, %arg0, %c0_i32 : i32
    %1 = arith.extui %0 : i1 to i32
    %c0_i32_0 = arith.constant 0 : i32
    %2 = arith.cmpi ne, %1, %c0_i32_0 : i32
    scf.if %2 {
      %c0_8 = arith.constant 0 : index
      %c0_9 = arith.constant 0 : index
      %10 = vector.load %arg1[%c0_8, %c0_9] : memref<16x8xf32, #tpu.memory_space<vmem>>, vector<16x8xf32>
      %c0_10 = arith.constant 0 : index
      %c0_11 = arith.constant 0 : index
      %11 = vector.load %arg2[%c0_10, %c0_11] : memref<8x32xf32, #tpu.memory_space<vmem>>, vector<8x32xf32>
      %cst_12 = arith.constant dense<0.000000e+00> : vector<16x32xf32>
      %12 = tpu.matmul %10, %11, %cst_12 {dimension_numbers = #tpu.dot_dimension_numbers<[1], [0], [0], [1], [0, 0, 1, 1], [], []>} : vector<16x8xf32>, vector<8x32xf32>, vector<16x32xf32> -> vector<16x32xf32>
      %c0_13 = arith.constant 0 : index
      %c0_14 = arith.constant 0 : index
      %13 = vector.load %arg6[%c0_13, %c0_14] : memref<16x32xf32, #tpu.memory_space<vmem>>, vector<16x32xf32>
      tpu.vector_store %arg6[%c0_13, %c0_14], %12 {strides = array<i32>} : memref<16x32xf32, #tpu.memory_space<vmem>>, vector<16x32xf32>,
    } else {
    }
    %c0 = arith.constant 0 : index
    %c0_1 = arith.constant 0 : index
    %3 = vector.load %arg4[%c0, %c0_1] : memref<8x16xf32, #tpu.memory_space<vmem>>, vector<8x16xf32>
    %c0_2 = arith.constant 0 : index
    %c0_3 = arith.constant 0 : index
    %4 = vector.load %arg6[%c0_2, %c0_3] : memref<16x32xf32, #tpu.memory_space<vmem>>, vector<16x32xf32>
    %cst = arith.constant dense<0.000000e+00> : vector<8x32xf32>
    %5 = tpu.matmul %3, %4, %cst {dimension_numbers = #tpu.dot_dimension_numbers<[1], [0], [0], [1], [0, 0, 1, 1], [], []>} : vector<8x16xf32>, vector<16x32xf32>, vector<8x32xf32> -> vector<8x32xf32>
    %c0_4 = arith.constant 0 : index
    %c0_5 = arith.constant 0 : index
    %6 = vector.load %arg3[%c0_4, %c0_5] : memref<1x32xf32, #tpu.memory_space<vmem>>, vector<1x32xf32>
    %7 = vector.broadcast %6 : vector<1x32xf32> to vector<8x32xf32>
    %8 = arith.addf %5, %7 : vector<8x32xf32>
    %c0_6 = arith.constant 0 : index
    %c0_7 = arith.constant 0 : index
    %9 = vector.load %arg5[%c0_6, %c0_7] : memref<8x32xf32, #tpu.memory_space<vmem>>, vector<8x32xf32>
    tpu.vector_store %arg5[%c0_6, %c0_7], %8 {strides = array<i32>} : memref<8x32xf32, #tpu.memory_space<vmem>>, vector<8x32xf32>,
    return
  }
  func.func @transform_0(%arg0: i32) -> (i32, i32) {
    %c0_i32 = arith.constant 0 : i32
    %c0_i32_0 = arith.constant 0 : i32
    %c0_i32_1 = arith.constant 0 : i32
    return %c0_i32, %c0_i32_0 : i32, i32
  }
  func.func @transform_1(%arg0: i32) -> (i32, i32) {
    %c0_i32 = arith.constant 0 : i32
    %c0_i32_0 = arith.constant 0 : i32
    %c0_i32_1 = arith.constant 0 : i32
    return %c0_i32, %c0_i32_0 : i32, i32
  }
  func.func @transform_2(%arg0: i32) -> (i32, i32) {
    %c0_i32 = arith.constant 0 : i32
    %c0_i32_0 = arith.constant 0 : i32
    %c0_i32_1 = arith.constant 0 : i32
    return %c0_i32, %c0_i32_0 : i32, i32
  }
  func.func @transform_3(%arg0: i32) -> (i32, i32) {
    %c0_i32 = arith.constant 0 : i32
    %c0_i32_0 = arith.constant 0 : i32
    return %arg0, %c0_i32 : i32, i32
  }
  func.func @transform_4(%arg0: i32) -> (i32, i32) {
    %c0_i32 = arith.constant 0 : i32
    %c0_i32_0 = arith.constant 0 : i32
    return %arg0, %c0_i32 : i32, i32
  }
}

</mosaic_0001>

<bundles_post_ra>
// kernel: tpu_custom_call.1
= control target key start
LH: loop header
LB: loop body
LE: loop exit
PB: predicated region body
PF: predicated region fallthrough
CT: control target
= control target key end

     0   :  { %9 = vsyncpa [#allocation4], 0  ;;  %s594_s0 = inlined_call_operand.vmem [shape: f32[16,8], index: 0, kind: input, shape index: {}]   ;;  %s595_s1 = inlined_call_operand.vmem [shape: f32[8,32], index: 1, kind: input, shape index: {}]   ;;  %s596_s2 = inlined_call_operand.vmem [shape: f32[1,32], index: 2, kind: input, shape index: {}]   ;;  %s597_s3 = inlined_call_operand.vmem [shape: f32[16,16], index: 3, kind: input, shape index: {}]   ;;  %s598_s4 = inlined_call_operand.hbm [shape: f32[16,32], index: 4, kind: output, shape index: {}]  }
   0x1   :  { %11 = vsyncpa [#allocation4 + $0x1], 0  ;;  %s485_s15 = smov 0   ;;  %s487_s16 = smov 0  }
   0x2   :  { %s489_s17 = smov 0   ;;  %s491_s18 = smov 0  }
   0x3 LB: > { %s506_s19 = sadd.s32 4294967295, %s458_s18   ;;  %s341_s20 = sadd.s32 4294967294, %s458_s18   ;;  %s458_s18 = sphi %s491_s18, %s604_s18   ;;  %s454_s17 = sphi %s489_s17, %s603_s17   ;;  %s450_s16 = sphi %s487_s16, %s602_s16   ;;  %s446_s15 = sphi %s485_s15, %s601_s15  }
   0x4   : > { %s510_s21 = sadd.s32 1, %s458_s18   ;;  %s113_s22 = sadd.s32 1, %s454_s17 }
   0x5   : > { %s110_s23 = ssub.s32 %s458_s18, %s510_s21  ;;  %p123_p0 = scmp.ne.s32.totalorder %s454_s17, %s450_s16 }
   0x6   : > { %p111_p1 = scmp.eq.s32.totalorder %s110_s23, 0  ;;  %p124_p2 = scmp.eq.s32.totalorder %s506_s19, 1 }
   0x7   : > { %p129_p3 = scmp.ne.s32.totalorder %s450_s16, %s446_s15  ;;  %p130_p4 = scmp.eq.s32.totalorder %s341_s20, 1 }
   0x8   : > { %s521_s24 = scalar_select %p111_p1, %s454_s17, %s113_s22  }
   0x9   : > { %p523_p5 = por %p124_p2, %p123_p0  ;;  %p527_p6 = por %p130_p4, %p129_p3 }
   0xa   : > { %p344_p7 = scmp.ge.s32.totalorder %s458_s18, 1  ;;  %p164_p8 = scmp.lt.s32.totalorder %s458_s18, 3 }
   0xc   : > { %p165_p9 = pnand %p344_p7, %p164_p8 }
   0xd   : > { %s186_s27 = sand.u32 (!%p165_p9), 1, %s450_s16   ;;  %p189_p10 = scmp.lt.s32.totalorder (!%p165_p9), %s506_s19, 1 }
   0xe   : > { %168 = sbr.rel (%p165_p9) target bundleno = 296 (0x128), region = 36  ;;  %s537_s28 = sshll.u32 (!%p165_p9), %s186_s27, 3 }
   0xf   : > { %s188_s8 = scalar_lea.vmem (!%p165_p9), [#allocation3], %s537_s28  ;;  %p347_p11 = scmp.ne.s32.totalorder (!%p165_p9), %s506_s19, 0 }
  0x13   : > { %s190_s29 = scalar_select %p189_p10, %s506_s19, 1 }
  0x14   : > { %196 = sbr.rel (%p347_p11) target bundleno = 155 (0x9b), region = 40 }
  0x15   : > { %s346_s30 = sshll.u32 %s190_s29, 3 }
  0x16   : > { %s192_s7 = scalar_lea.vmem %s597_s3, %s346_s30 }
  0x19   : > { %v199_v0 = vld [vmem:[%s595_s1] sm:$0xff]  ;;  %vm200_vm0 = vcmask 64512   ;;  %v198_v2 = vld [vmem:[%s594_s0 + $0x8] sm:$0xff]  ;;  %vm230_vm1 = vcmask 261120  }
  0x1a   : > { %v197_v1 = vld [vmem:[%s594_s0] sm:$0xff]  ;;  %222 = vmatpush.msra.mxu0 %v199_v0  ;;  %355 = vmatpush.msra.mxu1 %v199_v0 }
  0x1b   : > { %348 = vmatmul.msk.f32.vlgmr.msra.gmra.mxu0 %vm200_vm0, %v197_v1  ;;  %349 = vmatmul.msk.f32.vlgmr.msra.gmra.mxu1 %vm200_vm0, %v198_v2 }
  0x98   : > { %v224_v3 = vpop.f32.mrf.mxu0  ;;  %v227_v4 = vpop.f32.mrf.mxu1 }
  0x99   : > { %231 = vst.msk [vmem:[#allocation2] sm:$0xff] %vm230_vm1, %v224_v3 }
  0x9a   : > { %232 = vst.msk [vmem:[#allocation2 + $0x8] sm:$0xff] %vm230_vm1, %v227_v4 }
  0x9b PF: > { %v233_v7 = vld [vmem:[%s192_s7] sm:$0xff]  ;;  %vm240_vm2 = vcmask 130048   ;;  %s352_s20 = sshll.u32 %s506_s19, 3  ;;  %s279_s6 = sshll.u32 %s188_s8, 4  ;;  %vm264_vm3 = vcmask 261120   ;;  %s280_s6 = int_to_ptr.vmem [resolvable:$true] %s279_s6 }
  0x9c   : > { %s277_s29 = scalar_lea.hbm %s598_s4, %s352_s20  ;;  %v395_v8 = vld [vmem:[%s596_s2] ss:$0 sm:$0xff]  ;;  %s267_s19 = scalar_lea.sflag [#allocation4], %s186_s27 }
  0x9d   : > { %s281_s9 = sshll.u32 %s277_s29, 4  ;;  %s416_s13 = scalar_lea.hbm %s598_s4, 16  ;;  %s282_s9 = int_to_ptr.hbm [resolvable:$true] %s281_s9 }
  0x9e   : > { %s410_s7 = sshra.s32 %s282_s9, 4  ;;  %s411_s7 = int_to_ptr.hbm [resolvable:$true] %s410_s7 }
  0x9f   : > { %s412_s10 = scalar_lea.hbm %s411_s7, 8  ;;  %p417_p1 = scmp.lt.s32.totalorder %s411_s7, %s598_s4 }
  0xa0   : > { %v234_v6 = vld [vmem:[#allocation2] sm:$0xff]  ;;  %p413_p12 = scmp.ne.s32.totalorder %s411_s7, %s412_s10  ;;  %p418_p2 = scmp.lt.s32.totalorder %s416_s13, %s412_s10 }
  0xa1   : > { %v235_v5 = vld [vmem:[#allocation2 + $0x8] sm:$0xff] }
  0xa2   : > { %258 = vmatpush.msra.mxu0 %v235_v5  ;;  %p414_p13 = pnand %p413_p12, %p523_p5  ;;  %p419_p3 = por %p418_p2, %p417_p1 }
  0xa4   : > { %259 = vmatpush.msra.mxu0 %v234_v6  ;;  %p415_p0 = pneg %p414_p13 }
  0xa5   : > { %350 = vmatmul.msk.f32.vlgmr.msra.gmra.mxu0 %vm240_vm2, %v233_v7 }
  0xa6   : > { %p420_p4 = pnand %p419_p3, %p415_p0 }
 0x122   : > { %v261_v9 = vpop.f32.mrf.mxu0 }
 0x123   : > { %v262_v10 = vadd.f32 %v395_v8, %v261_v9 }
 0x125   : > { %265 = vst.msk [vmem:[%s188_s8] sm:$0xff] %vm264_vm3, %v262_v10 }
 0x126   : > { %423 = shalt.err (!%p420_p4)
}
 0x127   : > { %356 = dma.vmem_to_hbm [thread:$0]  (%p523_p5), %s280_s6, 128, %s282_s9, %s267_s19  }
 0x128 PF: > { %p362_p7 = scmp.ge.s32.totalorder %s458_s18, 2  ;;  %s293_s27 = sand.u32 1, %s446_s15  }
 0x129   : > { %s294_s28 = scalar_lea.sflag [#allocation4], %s293_s27 }
 0x12a   : > { %p359_p8 = pnand %p362_p7, %p527_p6 }
 0x12c   : > { %p360_p9 = pneg %p359_p8 }
 0x12e   : > { %441 = dma.done.wait (%p360_p9), %s294_s28, 128  }
 0x12f   : > { %443 = vsyncadd (%p360_p9), %s294_s28, 4294967168  ;;  %p14_p10 = scmp.ge.s32.totalorder %s510_s21, 4   ;;  %s601_s15 = smov %s450_s16 }
 0x130   : > { %s602_s16 = smov %s454_s17  ;;  %s603_s17 = smov %s521_s24 }
 0x131   : > { %s604_s18 = smov %s510_s21  ;;  %16 = sbr.rel (!%p14_p10) target bundleno = 3 (0x3), region = 75 }
 0x136   :  { %300 = vsyncpa [#allocation4], 1 }
 0x137   :  { %302 = vsyncpa [#allocation4 + $0x1], 1 }

</bundles_post_ra>
